<compile_context>
chip_gen: v5e
topology: v5e:2x2
jax: 0.10.0
libtpu: 0.0.40
codegen_flags: <defaults>
</compile_context>

<pallas_src>
import functools
import math

import jax
import jax.numpy as jnp
from jax import lax
from jax.experimental import pallas as pl
from jax.experimental.pallas import tpu as pltpu

_EPS = 1e-12  # matches torch.nn.functional.normalize default


def _round_up(a: int, b: int) -> int:
    return (a + b - 1) // b * b


def add_margin_kernel(x_ref, w_ref, inv_wn_ref, label_ref, out_ref, *, s, m):
    """Writes one (tm, tn) output tile: s*cosine, minus s*m at the label column."""
    j = pl.program_id(1)

    x = x_ref[...].astype(jnp.float32)                     # (tm, D)
    w = w_ref[...]                                         # (tn, D)

    # 1 / max(||x||, eps)  ==  rsqrt(max(||x||^2, eps^2))   -> EUP rsqrt
    nsq = jnp.sum(x * x, axis=-1, keepdims=True)           # (tm, 1)
    inv_xn = lax.rsqrt(jnp.maximum(nsq, jnp.float32(_EPS * _EPS)))

    xd = x.astype(w.dtype) if w.dtype != jnp.float32 else x
    raw = lax.dot_general(                                  # x @ w.T on the MXU
        xd, w,
        dimension_numbers=(((1,), (1,)), ((), ())),
        preferred_element_type=jnp.float32,
    )                                                       # (tm, tn)

    # cosine = (x @ w.T) / (||x|| * ||w||): post-matmul row/column rescale.
    cosine = raw * inv_xn * inv_wn_ref[...].astype(jnp.float32)

    tm, tn = cosine.shape
    cls = j * tn + lax.broadcasted_iota(jnp.int32, (tm, tn), 1)
    scaled = jnp.float32(s) * cosine
    out = jnp.where(cls == label_ref[...], scaled - jnp.float32(s * m), scaled)
    out_ref[...] = out.astype(out_ref.dtype)


def add_margin_product(x, weight, label, s=30.0, m=0.4, *,
                       block_b=256, block_c=512, mxu_dtype=None):
    """x: (B, D) f32, weight: (C, D) f32, label: (B,) int -> (B, C) f32."""
    B, D = x.shape
    C, D2 = weight.shape
    assert D == D2, (D, D2)

    x = x.astype(jnp.float32)
    weight = weight.astype(jnp.float32)

    # Per-class inverse norms, computed once (tiny (1, C) side input).
    inv_wn = lax.rsqrt(
        jnp.maximum(jnp.sum(weight * weight, axis=1), jnp.float32(_EPS * _EPS)))

    # Tile sizes: sublane-aligned batch tiles, lane-dense (x128) class tiles.
    tm = min(_round_up(block_b, 8), _round_up(B, 8))
    tn = min(_round_up(block_c, 128), _round_up(C, 128))
    Bp = _round_up(B, tm)
    Cp = _round_up(C, tn)

    xp = jnp.pad(x, ((0, Bp - B), (0, 0)))
    wp = jnp.pad(weight, ((0, Cp - C), (0, 0)))
    if mxu_dtype is not None:
        wp = wp.astype(mxu_dtype)        # stream the weight in reduced precision
    inv_wn_p = jnp.pad(inv_wn, (0, Cp - C)).reshape(1, Cp)
    label_p = jnp.pad(label.astype(jnp.int32).reshape(B, 1),
                      ((0, Bp - B), (0, 0)), constant_values=-1)

    grid = (Bp // tm, Cp // tn)
    kernel = functools.partial(add_margin_kernel, s=float(s), m=float(m))

    cost = pl.CostEstimate(
        flops=2 * Bp * Cp * D,
        transcendentals=Bp * grid[1],
        bytes_accessed=(Bp * D + Cp * D + Bp * Cp + Cp + Bp) * 4,
    )

    out = pl.pallas_call(
        kernel,
        out_shape=jax.ShapeDtypeStruct((Bp, Cp), jnp.float32),
        grid_spec=pltpu.PrefetchScalarGridSpec(
            num_scalar_prefetch=0,
            grid=grid,
            in_specs=[
                pl.BlockSpec((tm, D), lambda i, j: (i, 0)),   # x rows (stays resident over j)
                pl.BlockSpec((tn, D), lambda i, j: (j, 0)),   # weight class tile (streamed)
                pl.BlockSpec((1, tn), lambda i, j: (0, j)),   # 1/||w|| per class
                pl.BlockSpec((tm, 1), lambda i, j: (i, 0)),   # labels
            ],
            out_specs=pl.BlockSpec((tm, tn), lambda i, j: (i, j)),
        ),
        compiler_params=pltpu.CompilerParams(
            dimension_semantics=("parallel", "parallel"),
        ),
        cost_estimate=cost,
    )(xp, wp, inv_wn_p, label_p)

    return out[:B, :C]


def reference(x, weight, label, s=30.0, m=0.4):
    xn = x / jnp.maximum(jnp.linalg.norm(x, axis=1, keepdims=True), _EPS)
    wn = weight / jnp.maximum(jnp.linalg.norm(weight, axis=1, keepdims=True), _EPS)
    cosine = xn @ wn.T
    one_hot = jax.nn.one_hot(label, weight.shape[0], dtype=jnp.float32)
    return s * (one_hot * (cosine - m) + (1.0 - one_hot) * cosine)


if __name__ == "__main__":
    # Shapes implied by the module: batch=8, in_features=32, out_features=16.
    B, in_features, out_features = 8, 32, 16
    s_val, m_val = 30.0, 0.4

    key = jax.random.PRNGKey(0)
    kx, kw, kl = jax.random.split(key, 3)

    limit = math.sqrt(6.0 / (in_features + out_features))   # xavier_uniform
    weight = jax.random.uniform(kw, (out_features, in_features),
                                minval=-limit, maxval=limit, dtype=jnp.float32)
    x = jax.random.normal(kx, (B, in_features), dtype=jnp.float32)
    label = jax.random.randint(kl, (B,), 0, out_features, dtype=jnp.int32)

    out = jax.block_until_ready(
        add_margin_product(x, weight, label, s=s_val, m=m_val))
    ref = reference(x, weight, label, s=s_val, m=m_val)
    assert out.shape == (B, out_features)
    assert jnp.allclose(out, ref, atol=2e-4, rtol=2e-4), (
        f"f32 max abs diff {jnp.max(jnp.abs(out - ref))}")

    # Multi-tile sanity check (exercises the 2-D grid and class-tile offsets).
    B2, D2, C2 = 24, 160, 300
    k2x, k2w, k2l = jax.random.split(jax.random.PRNGKey(1), 3)
    x2 = jax.random.normal(k2x, (B2, D2), dtype=jnp.float32)
    w2 = jax.random.normal(k2w, (C2, D2), dtype=jnp.float32) * 0.05
    l2 = jax.random.randint(k2l, (B2,), 0, C2, dtype=jnp.int32)
    out2 = jax.block_until_ready(
        add_margin_product(x2, w2, l2, s=s_val, m=m_val, block_b=8, block_c=128))
    ref2 = reference(x2, w2, l2, s=s_val, m=m_val)
    assert jnp.allclose(out2, ref2, atol=2e-3, rtol=2e-3), (
        f"tiled max abs diff {jnp.max(jnp.abs(out2 - ref2))}")

    # bf16 MXU / bf16 weight-stream path (v6e / v7x); looser tolerance expected.
    out_bf16 = jax.block_until_ready(
        add_margin_product(x, weight, label, s=s_val, m=m_val,
                           mxu_dtype=jnp.bfloat16))
    assert jnp.allclose(out_bf16, ref, atol=5e-1, rtol=5e-2), (
        f"bf16 max abs diff {jnp.max(jnp.abs(out_bf16 - ref))}")

    print("KERNEL_OK")
</pallas_src>

<mosaic_0001>
module attributes {stable_mosaic.version = 11 : i64} {
  func.func @add_margin_kernel(%arg0: i32, %arg1: i32, %arg2: memref<8x32xf32, #tpu.memory_space<vmem>>, %arg3: memref<128x32xf32, #tpu.memory_space<vmem>>, %arg4: memref<1x128xf32, #tpu.memory_space<vmem>>, %arg5: memref<8x1xi32, #tpu.memory_space<vmem>>, %arg6: memref<8x128xf32, #tpu.memory_space<vmem>>) attributes {dimension_semantics = [#tpu.dimension_semantics<parallel>, #tpu.dimension_semantics<parallel>], iteration_bounds = array<i64: 1, 1>, scalar_prefetch = 0 : i64, scratch_operands = 0 : i64, tpu.core_type = #tpu.core_type<tc>, window_params = [{transform_indices = @transform_0, window_bounds = array<i64: 8, 32>}, {transform_indices = @transform_1, window_bounds = array<i64: 128, 32>}, {transform_indices = @transform_2, window_bounds = array<i64: 1, 128>}, {transform_indices = @transform_3, window_bounds = array<i64: 8, 1>}, {transform_indices = @transform_4, window_bounds = array<i64: 8, 128>}]} {
    %c0 = arith.constant 0 : index
    %c0_0 = arith.constant 0 : index
    %0 = vector.load %arg2[%c0, %c0_0] : memref<8x32xf32, #tpu.memory_space<vmem>>, vector<8x32xf32>
    %c0_1 = arith.constant 0 : index
    %c0_2 = arith.constant 0 : index
    %1 = vector.load %arg3[%c0_1, %c0_2] : memref<128x32xf32, #tpu.memory_space<vmem>>, vector<128x32xf32>
    %2 = arith.mulf %0, %0 : vector<8x32xf32>
    %cst = arith.constant dense<0.000000e+00> : vector<8xf32>
    %3 = vector.multi_reduction <add>, %2, %cst [1] : vector<8x32xf32> to vector<8xf32>
    %4 = vector.shape_cast %3 : vector<8xf32> to vector<8x1xf32>
    %cst_3 = arith.constant 1.000000e-24 : f32
    %5 = vector.broadcast %cst_3 : f32 to vector<8x1xf32>
    %6 = arith.maximumf %4, %5 : vector<8x1xf32>
    %7 = math.rsqrt %6 : vector<8x1xf32>
    %cst_4 = arith.constant dense<0.000000e+00> : vector<8x128xf32>
    %8 = tpu.matmul %0, %1, %cst_4 {dimension_numbers = #tpu.dot_dimension_numbers<[1], [1], [0], [0], [0, 0, 1, 0], [], []>} : vector<8x32xf32>, vector<128x32xf32>, vector<8x128xf32> -> vector<8x128xf32>
    %9 = vector.broadcast %7 : vector<8x1xf32> to vector<8x128xf32>
    %10 = arith.mulf %8, %9 : vector<8x128xf32>
    %c0_5 = arith.constant 0 : index
    %c0_6 = arith.constant 0 : index
    %11 = vector.load %arg4[%c0_5, %c0_6] : memref<1x128xf32, #tpu.memory_space<vmem>>, vector<1x128xf32>
    %12 = vector.broadcast %11 : vector<1x128xf32> to vector<8x128xf32>
    %13 = arith.mulf %10, %12 : vector<8x128xf32>
    %c128_i32 = arith.constant 128 : i32
    %14 = arith.muli %arg1, %c128_i32 : i32
    %15 = tpu.iota {dimensions = array<i32: 1>} : vector<8x128xi32>
    %16 = vector.broadcast %14 : i32 to vector<8x128xi32>
    %17 = arith.addi %16, %15 : vector<8x128xi32>
    %cst_7 = arith.constant 3.000000e+01 : f32
    %18 = vector.broadcast %cst_7 : f32 to vector<8x128xf32>
    %19 = arith.mulf %18, %13 : vector<8x128xf32>
    %c0_8 = arith.constant 0 : index
    %c0_9 = arith.constant 0 : index
    %20 = vector.load %arg5[%c0_8, %c0_9] : memref<8x1xi32, #tpu.memory_space<vmem>>, vector<8x1xi32>
    %21 = vector.broadcast %20 : vector<8x1xi32> to vector<8x128xi32>
    %22 = arith.cmpi eq, %17, %21 : vector<8x128xi32>
    %cst_10 = arith.constant 1.200000e+01 : f32
    %23 = vector.broadcast %cst_10 : f32 to vector<8x128xf32>
    %24 = arith.subf %19, %23 : vector<8x128xf32>
    %25 = arith.select %22, %24, %19 : vector<8x128xi1>, vector<8x128xf32>
    %c0_11 = arith.constant 0 : index
    %c0_12 = arith.constant 0 : index
    %26 = vector.load %arg6[%c0_11, %c0_12] : memref<8x128xf32, #tpu.memory_space<vmem>>, vector<8x128xf32>
    tpu.vector_store %arg6[%c0_11, %c0_12], %25 {strides = array<i32>} : memref<8x128xf32, #tpu.memory_space<vmem>>, vector<8x128xf32>,
    return
  }
  func.func @transform_0(%arg0: i32, %arg1: i32) -> (i32, i32) {
    %c0_i32 = arith.constant 0 : i32
    %c0_i32_0 = arith.constant 0 : i32
    return %arg0, %c0_i32 : i32, i32
  }
  func.func @transform_1(%arg0: i32, %arg1: i32) -> (i32, i32) {
    %c0_i32 = arith.constant 0 : i32
    %c0_i32_0 = arith.constant 0 : i32
    return %arg1, %c0_i32 : i32, i32
  }
  func.func @transform_2(%arg0: i32, %arg1: i32) -> (i32, i32) {
    %c0_i32 = arith.constant 0 : i32
    %c0_i32_0 = arith.constant 0 : i32
    return %c0_i32, %arg1 : i32, i32
  }
  func.func @transform_3(%arg0: i32, %arg1: i32) -> (i32, i32) {
    %c0_i32 = arith.constant 0 : i32
    %c0_i32_0 = arith.constant 0 : i32
    return %arg0, %c0_i32 : i32, i32
  }
  func.func @transform_4(%arg0: i32, %arg1: i32) -> (i32, i32) {
    %c0_i32 = arith.constant 0 : i32
    return %arg0, %arg1 : i32, i32
  }
}

</mosaic_0001>

<bundles_post_ra>
// kernel: tpu_custom_call.1
= control target key start
LH: loop header
LB: loop body
LE: loop exit
PB: predicated region body
PF: predicated region fallthrough
CT: control target
= control target key end

     0   :  { %vm36_vm0 = vcmask 261120   ;;  %s313_s0 = inlined_call_operand.vmem [shape: f32[8,32], index: 0, kind: input, shape index: {}]   ;;  %s314_s1 = inlined_call_operand.vmem [shape: f32[128,32], index: 1, kind: input, shape index: {}]   ;;  %s315_s2 = inlined_call_operand.vmem [shape: f32[1,128], index: 2, kind: input, shape index: {}]   ;;  %s316_s3 = inlined_call_operand.vmem [shape: s32[8,1], index: 3, kind: input, shape index: {}]   ;;  %s317_s4 = inlined_call_operand.hbm [shape: f32[8,128], index: 4, kind: output, shape index: {}]  }
   0x1   :  { %v34_v0 = vld [vmem:[%s314_s1 + $0x78] sm:$0xff]  ;;  %v33_v1 = vld [vmem:[%s314_s1 + $0x70] sm:$0xff]  ;;  %v18_v2 = vld [vmem:[%s313_s0] sm:$0xff] }
   0x2   :  { %158 = vmatpush.xpose.msk.msra.mxu0 %vm36_vm0, %v34_v0  ;;  %v35_v3 = vmul.f32 %v18_v2, %v18_v2 }
   0x3   :  { %9 = vsyncpa [#allocation3], 0  ;;  %v32_v4 = vld [vmem:[%s314_s1 + $0x68] sm:$0xff]  ;;  %v31_v6 = vld [vmem:[%s314_s1 + $0x60] sm:$0xff]  ;;  %v208_v13 = vmov 0   ;;  %v129_v29 = vlaneseq  ;;  %s149_s27 = sshll.u32 %s317_s4, 4  ;;  %s150_s27 = int_to_ptr.hbm [resolvable:$true] %s149_s27 }
   0x4   :  { %v37_v5 = vsel %vm36_vm0, %v35_v3, 0.0  ;;  %v30_v7 = vld [vmem:[%s314_s1 + $0x58] sm:$0xff]  ;;  %v29_v8 = vld [vmem:[%s314_s1 + $0x50] sm:$0xff]  ;;  %v28_v9 = vld [vmem:[%s314_s1 + $0x48] sm:$0xff]  ;;  %178 = vset.pattern.permute.xlu0 %v208_v13 }
   0x5   :  { %38 = vadd.xlane.f32.xlu0 %v37_v5  ;;  %v27_v10 = vld [vmem:[%s314_s1 + $0x40] sm:$0xff]  ;;  %v26_v11 = vld [vmem:[%s314_s1 + $0x38] sm:$0xff]  ;;  %v25_v14 = vld [vmem:[%s314_s1 + $0x30] sm:$0xff]  ;;  %v130_v34 = vand.u32 127, %v129_v29 }
   0x6   :  { %159 = vmatpush.xpose.msk.msra.mxu0 %vm36_vm0, %v33_v1  ;;  %v134_v12 = vld [vmem:[%s316_s3] sm:$0xff]  ;;  %v24_v15 = vld [vmem:[%s314_s1 + $0x28] sm:$0xff]  ;;  %v22_v17 = vld [vmem:[%s314_s1 + $0x18] sm:$0xff] }
   0x7   :  { %v23_v16 = vld [vmem:[%s314_s1 + $0x20] sm:$0xff]  ;;  %v21_v18 = vld [vmem:[%s314_s1 + $0x10] sm:$0xff]  ;;  %v20_v19 = vld [vmem:[%s314_s1 + $0x8] sm:$0xff] }
   0x8   :  { %v19_v20 = vld [vmem:[%s314_s1] sm:$0xff]  ;;  %s209_s1 = smov [#allocation2]  }
   0x9   :  { %v179_v30 = vld [vmem:[%s315_s2] ss:$0 sm:$0xff]  ;;  %s147_s0 = sshll.u32 %s209_s1, 4  ;;  %s148_s0 = int_to_ptr.vmem [resolvable:$true] %s147_s0 }
   0xa   :  { %160 = vmatpush.xpose.msk.msra.mxu0 %vm36_vm0, %v32_v4 }
   0xe   :  { %161 = vmatpush.xpose.msk.msra.mxu0 %vm36_vm0, %v31_v6 }
  0x12   :  { %162 = vmatpush.xpose.msk.msra.mxu0 %vm36_vm0, %v30_v7 }
  0x16   :  { %163 = vmatpush.xpose.msk.msra.mxu0 %vm36_vm0, %v29_v8 }
  0x19   :  { %136 = vperm.xlu0 %178, %v134_v12  }
  0x1a   :  { %164 = vmatpush.xpose.msk.msra.mxu0 %vm36_vm0, %v28_v9 }
  0x1e   :  { %165 = vmatpush.xpose.msk.msra.mxu0 %vm36_vm0, %v27_v10 }
  0x22   :  { %166 = vmatpush.xpose.msk.msra.mxu0 %vm36_vm0, %v26_v11 }
  0x26   :  { %167 = vmatpush.xpose.msk.msra.mxu0 %vm36_vm0, %v25_v14 }
  0x2a   :  { %168 = vmatpush.xpose.msk.msra.mxu0 %vm36_vm0, %v24_v15 }
  0x2e   :  { %169 = vmatpush.xpose.msk.msra.mxu0 %vm36_vm0, %v23_v16 }
  0x32   :  { %170 = vmatpush.xpose.msk.msra.mxu0 %vm36_vm0, %v22_v17 }
  0x36   :  { %171 = vmatpush.xpose.msk.msra.mxu0 %vm36_vm0, %v21_v18 }
  0x3a   :  { %172 = vmatpush.xpose.msk.msra.mxu0 %vm36_vm0, %v20_v19 }
  0x3e   :  { %173 = vmatpush.xpose.msk.msra.mxu0 %vm36_vm0, %v19_v20 }
  0x41   :  { %174 = vmatmul.msk.f32.vlgmr.msra.gmra.mxu0 %vm36_vm0, %v18_v2 }
  0x78   :  { %v39_v21 = vpop.xlane.xlu0 %38 }
  0x79   :  { %v40_v22 = vmax.f32 %v39_v21, 1e-24 }
  0x7b   :  { %180 = vrsqrt.f32 %v40_v22  ;;  %vm47_vm1 = vweird.f32 %v40_v22 }
  0x81   :  { %v181_v23 = vpop.eup %180 }
  0x82   :  { %v42_v24 = vmul.f32 %v181_v23, %v40_v22  ;;  %vm48_vm2 = vweird.f32 %v181_v23 }
  0x83   :  { %vm49_vm3 = vmor %vm47_vm1, %vm48_vm2 }
  0x84   :  { %v43_v25 = vmul.f32 %v181_v23, %v42_v24 }
  0x86   :  { %v44_v26 = vmul.f32 0.5, %v43_v25 }
  0x88   :  { %v45_v27 = vsub.f32 1.5, %v44_v26 }
  0x8a   :  { %v46_v28 = vmul.f32 %v181_v23, %v45_v27 }
  0x8b   :  { %v137_v36 = vpop.permute.xlu0 %136 }
  0x8c   :  { %v50_v31 = vsel %vm49_vm3, %v181_v23, %v46_v28  ;;  %vm138_vm4 = vcmp.eq.s32.totalorder %v130_v34, %v137_v36 }
  0xbe   :  { %v119_v32 = vpop.f32.mrf.mxu0 }
  0xbf   :  { %v122_v33 = vmul.f32 %v119_v32, %v50_v31 }
  0xc1   :  { %v127_v35 = vmul.f32 %v179_v30, %v122_v33 }
  0xc3   :  { %v133_v37 = vmul.f32 30.0, %v127_v35 }
  0xc5   :  { %v175_v38 = vadd.f32 -12.0, %v133_v37 }
  0xc7   :  { %v140_v39 = vsel %vm138_vm4, %v175_v38, %v133_v37 }
  0xc8   :  { %141 = vst [vmem:[#allocation2] sm:$0xff] %v140_v39 }
  0xc9   :  { %152 = dma.vmem_to_hbm [thread:$0]  %s148_s0, 128, %s150_s27, [#allocation3]  }
  0xca   :  { %206 = dma.done.wait [#allocation3], 128  }
  0xcb   :  { %207 = vsyncadd [#allocation3], 4294967168 }
  0xcc   :  { %157 = vsyncpa [#allocation3], 1 }

</bundles_post_ra>
